<compile_context>
chip_gen: v5e
topology: v5e:2x2
jax: 0.10.0
libtpu: 0.0.40
codegen_flags: <defaults>
</compile_context>

<pallas_src>
import functools

import jax
import jax.numpy as jnp
import numpy as np
from jax.experimental import pallas as pl
from jax.experimental.pallas import tpu as pltpu

_SQRT_HALF = 0.7071067811865476
_SQRT_2_OVER_PI = 0.7978845608028654


def _cdiv(a, b):
    return (a + b - 1) // b


def _round_up(a, b):
    return _cdiv(a, b) * b


# ---------------------------------------------------------------------------
# In-kernel math
# ---------------------------------------------------------------------------
def _erf_f32(x):
    """Abramowitz & Stegun 7.1.26 erf approximation, |err| <= 1.5e-7.

    Built only from primitives with guaranteed Mosaic lowerings (lax.erf has
    none); the exp lands on the otherwise idle EUP slot.  The divide is kept
    exact on purpose -- the approx EUP reciprocal would loosen the erf-exact
    path past the 1e-5 tolerance it is meant to guarantee (use
    approximate=True for the cheap tanh path instead).
    """
    a1, a2, a3, a4, a5 = (0.254829592, -0.284496736, 1.421413741,
                          -1.453152027, 1.061405429)
    p = 0.3275911
    ax = jnp.abs(x)
    t = 1.0 / (1.0 + p * ax)
    poly = t * (a1 + t * (a2 + t * (a3 + t * (a4 + t * a5))))
    y = 1.0 - poly * jnp.exp(-ax * ax)          # exp -> EUP
    return jnp.where(x < 0.0, -y, y)


def _gelu_f32(x, approximate):
    if approximate:
        # torch F.gelu(approximate="tanh"): a few FMAs + one EUP tanh.
        inner = _SQRT_2_OVER_PI * (x + 0.044715 * x * x * x)
        return 0.5 * x * (1.0 + jnp.tanh(inner))
    return 0.5 * x * (1.0 + _erf_f32(x * _SQRT_HALF))


def _geglu_kernel(x_ref, wv_ref, wg_ref, bv_ref, bg_ref, o_ref,
                  acc_v, acc_g, *, approximate):
    """Grid = (M tiles, N tiles, K tiles); K innermost ('arbitrary')."""
    k = pl.program_id(2)

    @pl.when(k == 0)
    def _():
        acc_v[...] = jnp.zeros_like(acc_v)
        acc_g[...] = jnp.zeros_like(acc_g)

    x = x_ref[...]
    # Two MXU matmuls per step (value / gate column tiles), f32 accumulation,
    # operands kept in their input dtype (no upcast).
    acc_v[...] += jnp.dot(x, wv_ref[...], preferred_element_type=jnp.float32)
    acc_g[...] += jnp.dot(x, wg_ref[...], preferred_element_type=jnp.float32)

    @pl.when(k == pl.num_programs(2) - 1)
    def _():
        val = acc_v[...] + bv_ref[...].astype(jnp.float32)
        gate = acc_g[...] + bg_ref[...].astype(jnp.float32)
        o_ref[...] = (val * _gelu_f32(gate, approximate)).astype(o_ref.dtype)


# ---------------------------------------------------------------------------
# Wrapper: tiling / padding / VMEM budgeting
# ---------------------------------------------------------------------------
def _vmem_capacity_bytes():
    try:
        return int(pltpu.get_tpu_info().vmem_capacity_bytes)
    except Exception:
        return 64 << 20          # conservative default: v7x per-TC VMEM


def _working_set_bytes(bm, bn, bk, itm_x, itm_w, itm_o):
    """Per-step VMEM footprint (conservatively assumes double-buffered W)."""
    return (bm * bk * itm_x * 2            # x tile (2 pipeline buffers)
            + 2 * bk * bn * itm_w * 2      # val + gate weight tiles
            + 2 * bn * 4 * 2               # biases
            + bm * bn * itm_o * 2          # output tile
            + 2 * bm * bn * 4)             # f32 accumulators (scratch)


def geglu(x, w, b, *, approximate=False, compute_dtype=None):
    """GeGLU forward.

    x: (..., d_in); w: (d_in, 2*d_out) [= torch proj.weight.T]; b: (2*d_out,).
    approximate=False -> exact erf gelu (torch default); True -> tanh gelu.
    compute_dtype: optional MXU operand dtype (e.g. jnp.bfloat16) for x / W.
    """
    *lead, d_in = x.shape
    two_d_out = w.shape[1]
    assert w.shape[0] == d_in and b.shape[-1] == two_d_out and two_d_out % 2 == 0
    d_out = two_d_out // 2

    out_dtype = x.dtype
    m = int(np.prod(lead)) if lead else 1

    # ---- N (d_out) tiling: lane-dense multiples of 128, <= 512 per tile ----
    n_n = _cdiv(_round_up(d_out, 128), 512)
    block_n = _round_up(_cdiv(d_out, n_n), 128)
    d_out_p = block_n * n_n

    # ---- K (d_in) tiling: only for large d_in, multiples of 256 ------------
    n_k = _cdiv(d_in, 2048)
    if n_k == 1:
        block_k = d_in                       # full extent, no padding needed
    else:
        block_k = _round_up(_cdiv(d_in, n_k), 256)
    d_in_p = block_k * n_k

    # ---- M (rows) tiling: VMEM-budget aware, padded via cdiv ---------------
    itm_x = jnp.dtype(compute_dtype if compute_dtype is not None else x.dtype).itemsize
    itm_w = jnp.dtype(compute_dtype if compute_dtype is not None else w.dtype).itemsize
    itm_o = jnp.dtype(out_dtype).itemsize
    cap = _vmem_capacity_bytes()
    budget = int(cap * 0.6)
    if m <= 256:
        block_m = _round_up(max(m, 8), 8)    # single tile, no wasted MXU rows
    else:
        block_m = 256
        for cand in (512, 768, 1024):        # bigger tiles on 128 MiB parts
            if _working_set_bytes(cand, block_n, block_k,
                                  itm_x, itm_w, itm_o) <= budget:
                block_m = cand
        while block_m > 256 and _cdiv(m, block_m) < 2:
            block_m -= 256                   # keep >=2 row tiles (pipeline / 2 TCs)
    m_p = _round_up(m, block_m)
    n_m = m_p // block_m

    # ---- wrapper-side layout: split val/gate, zero-pad to tile multiples ---
    w_val, w_gate = w[:, :d_out], w[:, d_out:]
    b_val, b_gate = b[:d_out], b[d_out:]
    x2d = x.reshape(m, d_in)
    if (m_p, d_in_p) != (m, d_in):
        x2d = jnp.pad(x2d, ((0, m_p - m), (0, d_in_p - d_in)))
    if (d_in_p, d_out_p) != (d_in, d_out):
        w_val = jnp.pad(w_val, ((0, d_in_p - d_in), (0, d_out_p - d_out)))
        w_gate = jnp.pad(w_gate, ((0, d_in_p - d_in), (0, d_out_p - d_out)))
    if d_out_p != d_out:
        b_val = jnp.pad(b_val, ((0, d_out_p - d_out),))
        b_gate = jnp.pad(b_gate, ((0, d_out_p - d_out),))
    b_val = b_val.reshape(1, d_out_p)
    b_gate = b_gate.reshape(1, d_out_p)
    if compute_dtype is not None:
        x2d = x2d.astype(compute_dtype)
        w_val = w_val.astype(compute_dtype)
        w_gate = w_gate.astype(compute_dtype)

    ws = _working_set_bytes(block_m, block_n, block_k, itm_x, itm_w, itm_o)
    vmem_limit = int(min(cap - (8 << 20), max(2 * ws, 48 << 20)))

    cost = pl.CostEstimate(
        flops=2 * m_p * d_in_p * 2 * d_out_p,
        transcendentals=m_p * d_out_p,
        bytes_accessed=(m_p * d_in_p * itm_x + 2 * d_in_p * d_out_p * itm_w
                        + m_p * d_out_p * itm_o),
    )

    # Weights / bias are grid-invariant iff there is no N or K tiling.
    invariant_w = (n_n == 1 and n_k == 1)

    def _w_spec(shape, index_map, single_buffer):
        if single_buffer:
            try:
                return pl.BlockSpec(shape, index_map,
                                    pipeline_mode=pl.Buffered(1))
            except Exception:
                pass
        return pl.BlockSpec(shape, index_map)

    def _call(single_buffer):
        grid_spec = pltpu.PrefetchScalarGridSpec(
            num_scalar_prefetch=0,
            grid=(n_m, n_n, n_k),
            in_specs=[
                pl.BlockSpec((block_m, block_k), lambda i, j, k: (i, k)),
                _w_spec((block_k, block_n), lambda i, j, k: (k, j), single_buffer),
                _w_spec((block_k, block_n), lambda i, j, k: (k, j), single_buffer),
                _w_spec((1, block_n), lambda i, j, k: (0, j), single_buffer),
                _w_spec((1, block_n), lambda i, j, k: (0, j), single_buffer),
            ],
            out_specs=pl.BlockSpec((block_m, block_n), lambda i, j, k: (i, j)),
            scratch_shapes=[pltpu.VMEM((block_m, block_n), jnp.float32),
                            pltpu.VMEM((block_m, block_n), jnp.float32)],
        )
        return pl.pallas_call(
            functools.partial(_geglu_kernel, approximate=approximate),
            out_shape=jax.ShapeDtypeStruct((m_p, d_out_p), out_dtype),
            grid_spec=grid_spec,
            compiler_params=pltpu.CompilerParams(
                dimension_semantics=("parallel", "parallel", "arbitrary"),
                vmem_limit_bytes=vmem_limit),
            cost_estimate=cost,
        )(x2d, w_val, w_gate, b_val, b_gate)

    if invariant_w:
        try:
            out2d = _call(True)
        except Exception:
            # Buffered(1) not supported by this jax/libtpu: retry with default
            # double-buffering (perf-only difference, correctness unaffected).
            out2d = _call(False)
    else:
        out2d = _call(False)

    out2d = out2d[:m, :d_out]
    return out2d.reshape(*lead, d_out)


def geglu_ref(x, w, b):
    """Pure-JAX reference mirroring the PyTorch forward (exact gelu)."""
    h = x @ w + b
    val, gate = jnp.split(h, 2, axis=-1)
    return val * jax.nn.gelu(gate, approximate=False)


if __name__ == "__main__":
    B, S = 2, 8
    d_in, d_out = 32, 32

    key = jax.random.PRNGKey(0)
    kx, kw, kb = jax.random.split(key, 3)

    x = jax.random.normal(kx, (B, S, d_in), jnp.float32)
    # proj weight stored as (in_features, out_features) == PyTorch weight.T
    w = jax.random.normal(kw, (d_in, 2 * d_out), jnp.float32) * 0.1
    b = jax.random.normal(kb, (2 * d_out,), jnp.float32) * 0.1

    # Exact (erf) gelu path -- matches torch default to tight tolerance.
    out = geglu(x, w, b)
    jax.block_until_ready(out)
    ref = geglu_ref(x, w, b)
    np.testing.assert_allclose(np.asarray(out), np.asarray(ref),
                               rtol=1e-5, atol=1e-5)

    # Awkward row count (exercises cdiv row padding + cropping).
    x_odd = jax.random.normal(kx, (5, 3, d_in), jnp.float32)
    out_odd = geglu(x_odd, w, b)
    jax.block_until_ready(out_odd)
    np.testing.assert_allclose(np.asarray(out_odd),
                               np.asarray(geglu_ref(x_odd, w, b)),
                               rtol=1e-5, atol=1e-5)

    # Opt-in fast path (tanh gelu) -- looser numerics by design.
    out_fast = geglu(x, w, b, approximate=True)
    jax.block_until_ready(out_fast)
    np.testing.assert_allclose(np.asarray(out_fast), np.asarray(ref),
                               rtol=5e-3, atol=5e-3)

    print("KERNEL_OK")
</pallas_src>

<mosaic_0001>
module attributes {stable_mosaic.version = 11 : i64} {
  func.func @_geglu_kernel(%arg0: i32, %arg1: i32, %arg2: i32, %arg3: memref<16x32xf32, #tpu.memory_space<vmem>>, %arg4: memref<32x128xf32, #tpu.memory_space<vmem>>, %arg5: memref<32x128xf32, #tpu.memory_space<vmem>>, %arg6: memref<1x128xf32, #tpu.memory_space<vmem>>, %arg7: memref<1x128xf32, #tpu.memory_space<vmem>>, %arg8: memref<16x128xf32, #tpu.memory_space<vmem>>, %arg9: memref<16x128xf32, #tpu.memory_space<vmem>>, %arg10: memref<16x128xf32, #tpu.memory_space<vmem>>) attributes {dimension_semantics = [#tpu.dimension_semantics<parallel>, #tpu.dimension_semantics<parallel>, #tpu.dimension_semantics<arbitrary>], iteration_bounds = array<i64: 1, 1, 1>, scalar_prefetch = 0 : i64, scratch_operands = 2 : i64, tpu.core_type = #tpu.core_type<tc>, window_params = [{transform_indices = @transform_0, window_bounds = array<i64: 16, 32>}, {pipeline_mode = #tpu.pipeline_mode<synchronous>, transform_indices = @transform_1, window_bounds = array<i64: 32, 128>}, {pipeline_mode = #tpu.pipeline_mode<synchronous>, transform_indices = @transform_2, window_bounds = array<i64: 32, 128>}, {pipeline_mode = #tpu.pipeline_mode<synchronous>, transform_indices = @transform_3, window_bounds = array<i64: 1, 128>}, {pipeline_mode = #tpu.pipeline_mode<synchronous>, transform_indices = @transform_4, window_bounds = array<i64: 1, 128>}, {transform_indices = @transform_5, window_bounds = array<i64: 16, 128>}]} {
    %c0_i32 = arith.constant 0 : i32
    %0 = arith.cmpi eq, %arg2, %c0_i32 : i32
    %1 = arith.extui %0 : i1 to i32
    %c0_i32_0 = arith.constant 0 : i32
    %2 = arith.cmpi ne, %1, %c0_i32_0 : i32
    scf.if %2 {
      %cst_17 = arith.constant 0.000000e+00 : f32
      %17 = vector.broadcast %cst_17 : f32 to vector<16x128xf32>
      %c0_18 = arith.constant 0 : index
      %c0_19 = arith.constant 0 : index
      %18 = vector.load %arg9[%c0_18, %c0_19] : memref<16x128xf32, #tpu.memory_space<vmem>>, vector<16x128xf32>
      tpu.vector_store %arg9[%c0_18, %c0_19], %17 {strides = array<i32>} : memref<16x128xf32, #tpu.memory_space<vmem>>, vector<16x128xf32>,
      %cst_20 = arith.constant 0.000000e+00 : f32
      %19 = vector.broadcast %cst_20 : f32 to vector<16x128xf32>
      %c0_21 = arith.constant 0 : index
      %c0_22 = arith.constant 0 : index
      %20 = vector.load %arg10[%c0_21, %c0_22] : memref<16x128xf32, #tpu.memory_space<vmem>>, vector<16x128xf32>
      tpu.vector_store %arg10[%c0_21, %c0_22], %19 {strides = array<i32>} : memref<16x128xf32, #tpu.memory_space<vmem>>, vector<16x128xf32>,
    } else {
    }
    %c0 = arith.constant 0 : index
    %c0_1 = arith.constant 0 : index
    %3 = vector.load %arg3[%c0, %c0_1] : memref<16x32xf32, #tpu.memory_space<vmem>>, vector<16x32xf32>
    %c0_2 = arith.constant 0 : index
    %c0_3 = arith.constant 0 : index
    %4 = vector.load %arg9[%c0_2, %c0_3] : memref<16x128xf32, #tpu.memory_space<vmem>>, vector<16x128xf32>
    %c0_4 = arith.constant 0 : index
    %c0_5 = arith.constant 0 : index
    %5 = vector.load %arg4[%c0_4, %c0_5] : memref<32x128xf32, #tpu.memory_space<vmem>>, vector<32x128xf32>
    %cst = arith.constant dense<0.000000e+00> : vector<16x128xf32>
    %6 = tpu.matmul %3, %5, %cst {dimension_numbers = #tpu.dot_dimension_numbers<[1], [0], [0], [1], [0, 0, 1, 1], [], []>} : vector<16x32xf32>, vector<32x128xf32>, vector<16x128xf32> -> vector<16x128xf32>
    %7 = arith.addf %4, %6 : vector<16x128xf32>
    %c0_6 = arith.constant 0 : index
    %c0_7 = arith.constant 0 : index
    %8 = vector.load %arg9[%c0_6, %c0_7] : memref<16x128xf32, #tpu.memory_space<vmem>>, vector<16x128xf32>
    tpu.vector_store %arg9[%c0_6, %c0_7], %7 {strides = array<i32>} : memref<16x128xf32, #tpu.memory_space<vmem>>, vector<16x128xf32>,
    %c0_8 = arith.constant 0 : index
    %c0_9 = arith.constant 0 : index
    %9 = vector.load %arg10[%c0_8, %c0_9] : memref<16x128xf32, #tpu.memory_space<vmem>>, vector<16x128xf32>
    %c0_10 = arith.constant 0 : index
    %c0_11 = arith.constant 0 : index
    %10 = vector.load %arg5[%c0_10, %c0_11] : memref<32x128xf32, #tpu.memory_space<vmem>>, vector<32x128xf32>
    %cst_12 = arith.constant dense<0.000000e+00> : vector<16x128xf32>
    %11 = tpu.matmul %3, %10, %cst_12 {dimension_numbers = #tpu.dot_dimension_numbers<[1], [0], [0], [1], [0, 0, 1, 1], [], []>} : vector<16x32xf32>, vector<32x128xf32>, vector<16x128xf32> -> vector<16x128xf32>
    %12 = arith.addf %9, %11 : vector<16x128xf32>
    %c0_13 = arith.constant 0 : index
    %c0_14 = arith.constant 0 : index
    %13 = vector.load %arg10[%c0_13, %c0_14] : memref<16x128xf32, #tpu.memory_space<vmem>>, vector<16x128xf32>
    tpu.vector_store %arg10[%c0_13, %c0_14], %12 {strides = array<i32>} : memref<16x128xf32, #tpu.memory_space<vmem>>, vector<16x128xf32>,
    %c0_i32_15 = arith.constant 0 : i32
    %14 = arith.cmpi eq, %arg2, %c0_i32_15 : i32
    %15 = arith.extui %14 : i1 to i32
    %c0_i32_16 = arith.constant 0 : i32
    %16 = arith.cmpi ne, %15, %c0_i32_16 : i32
    scf.if %16 {
      %c0_17 = arith.constant 0 : index
      %c0_18 = arith.constant 0 : index
      %17 = vector.load %arg9[%c0_17, %c0_18] : memref<16x128xf32, #tpu.memory_space<vmem>>, vector<16x128xf32>
      %c0_19 = arith.constant 0 : index
      %c0_20 = arith.constant 0 : index
      %18 = vector.load %arg6[%c0_19, %c0_20] : memref<1x128xf32, #tpu.memory_space<vmem>>, vector<1x128xf32>
      %19 = vector.broadcast %18 : vector<1x128xf32> to vector<16x128xf32>
      %20 = arith.addf %17, %19 : vector<16x128xf32>
      %c0_21 = arith.constant 0 : index
      %c0_22 = arith.constant 0 : index
      %21 = vector.load %arg10[%c0_21, %c0_22] : memref<16x128xf32, #tpu.memory_space<vmem>>, vector<16x128xf32>
      %c0_23 = arith.constant 0 : index
      %c0_24 = arith.constant 0 : index
      %22 = vector.load %arg7[%c0_23, %c0_24] : memref<1x128xf32, #tpu.memory_space<vmem>>, vector<1x128xf32>
      %23 = vector.broadcast %22 : vector<1x128xf32> to vector<16x128xf32>
      %24 = arith.addf %21, %23 : vector<16x128xf32>
      %cst_25 = arith.constant 5.000000e-01 : f32
      %25 = vector.broadcast %cst_25 : f32 to vector<16x128xf32>
      %26 = arith.mulf %25, %24 : vector<16x128xf32>
      %cst_26 = arith.constant 0.707106769 : f32
      %27 = vector.broadcast %cst_26 : f32 to vector<16x128xf32>
      %28 = arith.mulf %24, %27 : vector<16x128xf32>
      %29 = math.absf %28 : vector<16x128xf32>
      %cst_27 = arith.constant 0.327591091 : f32
      %30 = vector.broadcast %cst_27 : f32 to vector<16x128xf32>
      %31 = arith.mulf %30, %29 : vector<16x128xf32>
      %cst_28 = arith.constant 1.000000e+00 : f32
      %32 = vector.broadcast %cst_28 : f32 to vector<16x128xf32>
      %33 = arith.addf %32, %31 : vector<16x128xf32>
      %cst_29 = arith.constant 1.000000e+00 : f32
      %34 = vector.broadcast %cst_29 : f32 to vector<16x128xf32>
      %35 = arith.divf %34, %33 : vector<16x128xf32>
      %cst_30 = arith.constant 1.06140542 : f32
      %36 = vector.broadcast %cst_30 : f32 to vector<16x128xf32>
      %37 = arith.mulf %35, %36 : vector<16x128xf32>
      %cst_31 = arith.constant -1.45315206 : f32
      %38 = vector.broadcast %cst_31 : f32 to vector<16x128xf32>
      %39 = arith.addf %38, %37 : vector<16x128xf32>
      %40 = arith.mulf %35, %39 : vector<16x128xf32>
      %cst_32 = arith.constant 1.42141378 : f32
      %41 = vector.broadcast %cst_32 : f32 to vector<16x128xf32>
      %42 = arith.addf %41, %40 : vector<16x128xf32>
      %43 = arith.mulf %35, %42 : vector<16x128xf32>
      %cst_33 = arith.constant -0.284496725 : f32
      %44 = vector.broadcast %cst_33 : f32 to vector<16x128xf32>
      %45 = arith.addf %44, %43 : vector<16x128xf32>
      %46 = arith.mulf %35, %45 : vector<16x128xf32>
      %cst_34 = arith.constant 0.254829586 : f32
      %47 = vector.broadcast %cst_34 : f32 to vector<16x128xf32>
      %48 = arith.addf %47, %46 : vector<16x128xf32>
      %49 = arith.mulf %35, %48 : vector<16x128xf32>
      %cst_35 = arith.constant 0.000000e+00 : f32
      %50 = vector.broadcast %cst_35 : f32 to vector<16x128xf32>
      %51 = arith.subf %50, %29 : vector<16x128xf32>
      %52 = arith.mulf %51, %29 : vector<16x128xf32>
      %53 = math.exp %52 : vector<16x128xf32>
      %54 = arith.mulf %49, %53 : vector<16x128xf32>
      %cst_36 = arith.constant 1.000000e+00 : f32
      %55 = vector.broadcast %cst_36 : f32 to vector<16x128xf32>
      %56 = arith.subf %55, %54 : vector<16x128xf32>
      %cst_37 = arith.constant 0.000000e+00 : f32
      %57 = vector.broadcast %cst_37 : f32 to vector<16x128xf32>
      %58 = arith.cmpf olt, %28, %57 : vector<16x128xf32>
      %cst_38 = arith.constant 0.000000e+00 : f32
      %59 = vector.broadcast %cst_38 : f32 to vector<16x128xf32>
      %60 = arith.subf %59, %56 : vector<16x128xf32>
      %61 = arith.select %58, %60, %56 : vector<16x128xi1>, vector<16x128xf32>
      %cst_39 = arith.constant 1.000000e+00 : f32
      %62 = vector.broadcast %cst_39 : f32 to vector<16x128xf32>
      %63 = arith.addf %62, %61 : vector<16x128xf32>
      %64 = arith.mulf %26, %63 : vector<16x128xf32>
      %65 = arith.mulf %20, %64 : vector<16x128xf32>
      %c0_40 = arith.constant 0 : index
      %c0_41 = arith.constant 0 : index
      %66 = vector.load %arg8[%c0_40, %c0_41] : memref<16x128xf32, #tpu.memory_space<vmem>>, vector<16x128xf32>
      tpu.vector_store %arg8[%c0_40, %c0_41], %65 {strides = array<i32>} : memref<16x128xf32, #tpu.memory_space<vmem>>, vector<16x128xf32>,
    } else {
    }
    return
  }
  func.func @transform_0(%arg0: i32, %arg1: i32, %arg2: i32) -> (i32, i32) {
    %c0_i32 = arith.constant 0 : i32
    return %arg0, %arg2 : i32, i32
  }
  func.func @transform_1(%arg0: i32, %arg1: i32, %arg2: i32) -> (i32, i32) {
    %c0_i32 = arith.constant 0 : i32
    return %arg2, %arg1 : i32, i32
  }
  func.func @transform_2(%arg0: i32, %arg1: i32, %arg2: i32) -> (i32, i32) {
    %c0_i32 = arith.constant 0 : i32
    return %arg2, %arg1 : i32, i32
  }
  func.func @transform_3(%arg0: i32, %arg1: i32, %arg2: i32) -> (i32, i32) {
    %c0_i32 = arith.constant 0 : i32
    %c0_i32_0 = arith.constant 0 : i32
    return %c0_i32, %arg1 : i32, i32
  }
  func.func @transform_4(%arg0: i32, %arg1: i32, %arg2: i32) -> (i32, i32) {
    %c0_i32 = arith.constant 0 : i32
    %c0_i32_0 = arith.constant 0 : i32
    return %c0_i32, %arg1 : i32, i32
  }
  func.func @transform_5(%arg0: i32, %arg1: i32, %arg2: i32) -> (i32, i32) {
    %c0_i32 = arith.constant 0 : i32
    return %arg0, %arg1 : i32, i32
  }
}

module attributes {stable_mosaic.version = 11 : i64} {
  func.func @_geglu_kernel(%arg0: i32, %arg1: i32, %arg2: i32, %arg3: memref<16x32xf32, #tpu.memory_space<vmem>>, %arg4: memref<32x128xf32, #tpu.memory_space<vmem>>, %arg5: memref<32x128xf32, #tpu.memory_space<vmem>>, %arg6: memref<1x128xf32, #tpu.memory_space<vmem>>, %arg7: memref<1x128xf32, #tpu.memory_space<vmem>>, %arg8: memref<16x128xf32, #tpu.memory_space<vmem>>, %arg9: memref<16x128xf32, #tpu.memory_space<vmem>>, %arg10: memref<16x128xf32, #tpu.memory_space<vmem>>) attributes {dimension_semantics = [#tpu.dimension_semantics<parallel>, #tpu.dimension_semantics<parallel>, #tpu.dimension_semantics<arbitrary>], iteration_bounds = array<i64: 1, 1, 1>, scalar_prefetch = 0 : i64, scratch_operands = 2 : i64, tpu.core_type = #tpu.core_type<tc>, window_params = [{transform_indices = @transform_0, window_bounds = array<i64: 16, 32>}, {transform_indices = @transform_1, window_bounds = array<i64: 32, 128>}, {transform_indices = @transform_2, window_bounds = array<i64: 32, 128>}, {transform_indices = @transform_3, window_bounds = array<i64: 1, 128>}, {transform_indices = @transform_4, window_bounds = array<i64: 1, 128>}, {transform_indices = @transform_5, window_bounds = array<i64: 16, 128>}]} {
    %c0_i32 = arith.constant 0 : i32
    %0 = arith.cmpi eq, %arg2, %c0_i32 : i32
    %1 = arith.extui %0 : i1 to i32
    %c0_i32_0 = arith.constant 0 : i32
    %2 = arith.cmpi ne, %1, %c0_i32_0 : i32
    scf.if %2 {
      %cst_17 = arith.constant 0.000000e+00 : f32
      %17 = vector.broadcast %cst_17 : f32 to vector<16x128xf32>
      %c0_18 = arith.constant 0 : index
      %c0_19 = arith.constant 0 : index
      %18 = vector.load %arg9[%c0_18, %c0_19] : memref<16x128xf32, #tpu.memory_space<vmem>>, vector<16x128xf32>
      tpu.vector_store %arg9[%c0_18, %c0_19], %17 {strides = array<i32>} : memref<16x128xf32, #tpu.memory_space<vmem>>, vector<16x128xf32>,
      %cst_20 = arith.constant 0.000000e+00 : f32
      %19 = vector.broadcast %cst_20 : f32 to vector<16x128xf32>
      %c0_21 = arith.constant 0 : index
      %c0_22 = arith.constant 0 : index
      %20 = vector.load %arg10[%c0_21, %c0_22] : memref<16x128xf32, #tpu.memory_space<vmem>>, vector<16x128xf32>
      tpu.vector_store %arg10[%c0_21, %c0_22], %19 {strides = array<i32>} : memref<16x128xf32, #tpu.memory_space<vmem>>, vector<16x128xf32>,
    } else {
    }
    %c0 = arith.constant 0 : index
    %c0_1 = arith.constant 0 : index
    %3 = vector.load %arg3[%c0, %c0_1] : memref<16x32xf32, #tpu.memory_space<vmem>>, vector<16x32xf32>
    %c0_2 = arith.constant 0 : index
    %c0_3 = arith.constant 0 : index
    %4 = vector.load %arg9[%c0_2, %c0_3] : memref<16x128xf32, #tpu.memory_space<vmem>>, vector<16x128xf32>
    %c0_4 = arith.constant 0 : index
    %c0_5 = arith.constant 0 : index
    %5 = vector.load %arg4[%c0_4, %c0_5] : memref<32x128xf32, #tpu.memory_space<vmem>>, vector<32x128xf32>
    %cst = arith.constant dense<0.000000e+00> : vector<16x128xf32>
    %6 = tpu.matmul %3, %5, %cst {dimension_numbers = #tpu.dot_dimension_numbers<[1], [0], [0], [1], [0, 0, 1, 1], [], []>} : vector<16x32xf32>, vector<32x128xf32>, vector<16x128xf32> -> vector<16x128xf32>
    %7 = arith.addf %4, %6 : vector<16x128xf32>
    %c0_6 = arith.constant 0 : index
    %c0_7 = arith.constant 0 : index
    %8 = vector.load %arg9[%c0_6, %c0_7] : memref<16x128xf32, #tpu.memory_space<vmem>>, vector<16x128xf32>
    tpu.vector_store %arg9[%c0_6, %c0_7], %7 {strides = array<i32>} : memref<16x128xf32, #tpu.memory_space<vmem>>, vector<16x128xf32>,
    %c0_8 = arith.constant 0 : index
    %c0_9 = arith.constant 0 : index
    %9 = vector.load %arg10[%c0_8, %c0_9] : memref<16x128xf32, #tpu.memory_space<vmem>>, vector<16x128xf32>
    %c0_10 = arith.constant 0 : index
    %c0_11 = arith.constant 0 : index
    %10 = vector.load %arg5[%c0_10, %c0_11] : memref<32x128xf32, #tpu.memory_space<vmem>>, vector<32x128xf32>
    %cst_12 = arith.constant dense<0.000000e+00> : vector<16x128xf32>
    %11 = tpu.matmul %3, %10, %cst_12 {dimension_numbers = #tpu.dot_dimension_numbers<[1], [0], [0], [1], [0, 0, 1, 1], [], []>} : vector<16x32xf32>, vector<32x128xf32>, vector<16x128xf32> -> vector<16x128xf32>
    %12 = arith.addf %9, %11 : vector<16x128xf32>
    %c0_13 = arith.constant 0 : index
    %c0_14 = arith.constant 0 : index
    %13 = vector.load %arg10[%c0_13, %c0_14] : memref<16x128xf32, #tpu.memory_space<vmem>>, vector<16x128xf32>
    tpu.vector_store %arg10[%c0_13, %c0_14], %12 {strides = array<i32>} : memref<16x128xf32, #tpu.memory_space<vmem>>, vector<16x128xf32>,
    %c0_i32_15 = arith.constant 0 : i32
    %14 = arith.cmpi eq, %arg2, %c0_i32_15 : i32
    %15 = arith.extui %14 : i1 to i32
    %c0_i32_16 = arith.constant 0 : i32
    %16 = arith.cmpi ne, %15, %c0_i32_16 : i32
    scf.if %16 {
      %c0_17 = arith.constant 0 : index
      %c0_18 = arith.constant 0 : index
      %17 = vector.load %arg9[%c0_17, %c0_18] : memref<16x128xf32, #tpu.memory_space<vmem>>, vector<16x128xf32>
      %c0_19 = arith.constant 0 : index
      %c0_20 = arith.constant 0 : index
      %18 = vector.load %arg6[%c0_19, %c0_20] : memref<1x128xf32, #tpu.memory_space<vmem>>, vector<1x128xf32>
      %19 = vector.broadcast %18 : vector<1x128xf32> to vector<16x128xf32>
      %20 = arith.addf %17, %19 : vector<16x128xf32>
      %c0_21 = arith.constant 0 : index
      %c0_22 = arith.constant 0 : index
      %21 = vector.load %arg10[%c0_21, %c0_22] : memref<16x128xf32, #tpu.memory_space<vmem>>, vector<16x128xf32>
      %c0_23 = arith.constant 0 : index
      %c0_24 = arith.constant 0 : index
      %22 = vector.load %arg7[%c0_23, %c0_24] : memref<1x128xf32, #tpu.memory_space<vmem>>, vector<1x128xf32>
      %23 = vector.broadcast %22 : vector<1x128xf32> to vector<16x128xf32>
      %24 = arith.addf %21, %23 : vector<16x128xf32>
      %cst_25 = arith.constant 5.000000e-01 : f32
      %25 = vector.broadcast %cst_25 : f32 to vector<16x128xf32>
      %26 = arith.mulf %25, %24 : vector<16x128xf32>
      %cst_26 = arith.constant 0.707106769 : f32
      %27 = vector.broadcast %cst_26 : f32 to vector<16x128xf32>
      %28 = arith.mulf %24, %27 : vector<16x128xf32>
      %29 = math.absf %28 : vector<16x128xf32>
      %cst_27 = arith.constant 0.327591091 : f32
      %30 = vector.broadcast %cst_27 : f32 to vector<16x128xf32>
      %31 = arith.mulf %30, %29 : vector<16x128xf32>
      %cst_28 = arith.constant 1.000000e+00 : f32
      %32 = vector.broadcast %cst_28 : f32 to vector<16x128xf32>
      %33 = arith.addf %32, %31 : vector<16x128xf32>
      %cst_29 = arith.constant 1.000000e+00 : f32
      %34 = vector.broadcast %cst_29 : f32 to vector<16x128xf32>
      %35 = arith.divf %34, %33 : vector<16x128xf32>
      %cst_30 = arith.constant 1.06140542 : f32
      %36 = vector.broadcast %cst_30 : f32 to vector<16x128xf32>
      %37 = arith.mulf %35, %36 : vector<16x128xf32>
      %cst_31 = arith.constant -1.45315206 : f32
      %38 = vector.broadcast %cst_31 : f32 to vector<16x128xf32>
      %39 = arith.addf %38, %37 : vector<16x128xf32>
      %40 = arith.mulf %35, %39 : vector<16x128xf32>
      %cst_32 = arith.constant 1.42141378 : f32
      %41 = vector.broadcast %cst_32 : f32 to vector<16x128xf32>
      %42 = arith.addf %41, %40 : vector<16x128xf32>
      %43 = arith.mulf %35, %42 : vector<16x128xf32>
      %cst_33 = arith.constant -0.284496725 : f32
      %44 = vector.broadcast %cst_33 : f32 to vector<16x128xf32>
      %45 = arith.addf %44, %43 : vector<16x128xf32>
      %46 = arith.mulf %35, %45 : vector<16x128xf32>
      %cst_34 = arith.constant 0.254829586 : f32
      %47 = vector.broadcast %cst_34 : f32 to vector<16x128xf32>
      %48 = arith.addf %47, %46 : vector<16x128xf32>
      %49 = arith.mulf %35, %48 : vector<16x128xf32>
      %cst_35 = arith.constant 0.000000e+00 : f32
      %50 = vector.broadcast %cst_35 : f32 to vector<16x128xf32>
      %51 = arith.subf %50, %29 : vector<16x128xf32>
      %52 = arith.mulf %51, %29 : vector<16x128xf32>
      %53 = math.exp %52 : vector<16x128xf32>
      %54 = arith.mulf %49, %53 : vector<16x128xf32>
      %cst_36 = arith.constant 1.000000e+00 : f32
      %55 = vector.broadcast %cst_36 : f32 to vector<16x128xf32>
      %56 = arith.subf %55, %54 : vector<16x128xf32>
      %cst_37 = arith.constant 0.000000e+00 : f32
      %57 = vector.broadcast %cst_37 : f32 to vector<16x128xf32>
      %58 = arith.cmpf olt, %28, %57 : vector<16x128xf32>
      %cst_38 = arith.constant 0.000000e+00 : f32
      %59 = vector.broadcast %cst_38 : f32 to vector<16x128xf32>
      %60 = arith.subf %59, %56 : vector<16x128xf32>
      %61 = arith.select %58, %60, %56 : vector<16x128xi1>, vector<16x128xf32>
      %cst_39 = arith.constant 1.000000e+00 : f32
      %62 = vector.broadcast %cst_39 : f32 to vector<16x128xf32>
      %63 = arith.addf %62, %61 : vector<16x128xf32>
      %64 = arith.mulf %26, %63 : vector<16x128xf32>
      %65 = arith.mulf %20, %64 : vector<16x128xf32>
      %c0_40 = arith.constant 0 : index
      %c0_41 = arith.constant 0 : index
      %66 = vector.load %arg8[%c0_40, %c0_41] : memref<16x128xf32, #tpu.memory_space<vmem>>, vector<16x128xf32>
      tpu.vector_store %arg8[%c0_40, %c0_41], %65 {strides = array<i32>} : memref<16x128xf32, #tpu.memory_space<vmem>>, vector<16x128xf32>,
    } else {
    }
    return
  }
  func.func @transform_0(%arg0: i32, %arg1: i32, %arg2: i32) -> (i32, i32) {
    %c0_i32 = arith.constant 0 : i32
    return %arg0, %arg2 : i32, i32
  }
  func.func @transform_1(%arg0: i32, %arg1: i32, %arg2: i32) -> (i32, i32) {
    %c0_i32 = arith.constant 0 : i32
    return %arg2, %arg1 : i32, i32
  }
  func.func @transform_2(%arg0: i32, %arg1: i32, %arg2: i32) -> (i32, i32) {
    %c0_i32 = arith.constant 0 : i32
    return %arg2, %arg1 : i32, i32
  }
  func.func @transform_3(%arg0: i32, %arg1: i32, %arg2: i32) -> (i32, i32) {
    %c0_i32 = arith.constant 0 : i32
    %c0_i32_0 = arith.constant 0 : i32
    return %c0_i32, %arg1 : i32, i32
  }
  func.func @transform_4(%arg0: i32, %arg1: i32, %arg2: i32) -> (i32, i32) {
    %c0_i32 = arith.constant 0 : i32
    %c0_i32_0 = arith.constant 0 : i32
    return %c0_i32, %arg1 : i32, i32
  }
  func.func @transform_5(%arg0: i32, %arg1: i32, %arg2: i32) -> (i32, i32) {
    %c0_i32 = arith.constant 0 : i32
    return %arg0, %arg1 : i32, i32
  }
}

</mosaic_0001>

<bundles_post_ra>
// kernel: tpu_custom_call.1
= control target key start
LH: loop header
LB: loop body
LE: loop exit
PB: predicated region body
PF: predicated region fallthrough
CT: control target
= control target key end

     0   :  { %10 = vsyncpa [#allocation5], 0  ;;  %s486_s0 = inlined_call_operand.hbm [shape: f32[16,32], index: 0, kind: input, shape index: {}]   ;;  %s487_s1 = inlined_call_operand.hbm [shape: f32[32,128], index: 1, kind: input, shape index: {}]   ;;  %s488_s2 = inlined_call_operand.hbm [shape: f32[32,128], index: 2, kind: input, shape index: {}]   ;;  %s489_s3 = inlined_call_operand.vmem [shape: f32[1,128], index: 3, kind: input, shape index: {}]   ;;  %s490_s4 = inlined_call_operand.vmem [shape: f32[1,128], index: 4, kind: input, shape index: {}]   ;;  %s491_s5 = inlined_call_operand.hbm [shape: f32[16,128], index: 5, kind: output, shape index: {}]  }
   0x1   :  { %11 = vsyncpa [#allocation8], 0 }
   0x2   :  { %12 = vsyncpa [#allocation6], 0  ;;  %s30_s20 = sshll.u32 %s487_s1, 4  ;;  %s404_s21 = smov [#allocation7]   ;;  %s31_s20 = int_to_ptr.hbm [resolvable:$true] %s30_s20 }
   0x3   :  { %s32_s22 = sshll.u32 %s404_s21, 4  ;;  %s17_s25 = sshll.u32 %s486_s0, 4  ;;  %s33_s22 = int_to_ptr.vmem [resolvable:$true] %s32_s22  ;;  %s18_s25 = int_to_ptr.hbm [resolvable:$true] %s17_s25 }
   0x4   :  { %s405_s26 = smov 128   ;;  %s406_s27 = smov 8  }
   0x5   :  { %38 = dma.hbm_to_vmem [thread:$0]  %s31_s20, 512, %s33_s22, [#allocation8], %s405_s26, %s405_s26, %s406_s27  }
   0x6   :  { %s407_s28 = smov [#allocation4]   ;;  %s43_s1 = sshll.u32 %s488_s2, 4  ;;  %s44_s1 = int_to_ptr.hbm [resolvable:$true] %s43_s1 }
   0x7   :  { %s19_s29 = sshll.u32 %s407_s28, 4  ;;  %s408_s0 = smov [#allocation9]   ;;  %s20_s29 = int_to_ptr.vmem [resolvable:$true] %s19_s29 }
   0x8   :  { %25 = dma.hbm_to_vmem [thread:$0]  %s18_s25, 256, %s20_s29, [#allocation5], %s405_s26, %s405_s26, %s406_s27  }
   0x9   :  { %s45_s7 = sshll.u32 %s408_s0, 4  ;;  %s46_s7 = int_to_ptr.vmem [resolvable:$true] %s45_s7 }
   0xa   :  { %51 = dma.hbm_to_vmem [thread:$0]  %s44_s1, 512, %s46_s7, [#allocation8], %s405_s26, %s405_s26, %s406_s27  }
   0xb   :  { %398 = dma.done.wait [#allocation5], 256  }
   0xc   :  { %399 = vsyncadd [#allocation5], 4294967040 }
   0xd   :  { %400 = dma.done.wait [#allocation8], 1024  }
   0xe   :  { %401 = vsyncadd [#allocation8], 4294966272  ;;  %v123_v0 = vld [vmem:[#allocation9 + $0x18] sm:$0xff]  ;;  %v122_v1 = vld [vmem:[#allocation9 + $0x10] sm:$0xff]  ;;  %vm84_vm0 = vcmask 261120   ;;  %s260_s13 = sshll.u32 %s491_s5, 4  ;;  %s261_s13 = int_to_ptr.hbm [resolvable:$true] %s260_s13 }
   0xf   :  { %136 = vmatpush.msra.mxu1 %v123_v0  ;;  %282 = vmatpush.msra.mxu3 %v123_v0  ;;  %v121_v2 = vld [vmem:[#allocation9 + $0x8] sm:$0xff]  ;;  %v83_v3 = vld [vmem:[#allocation7 + $0x18] sm:$0xff]  ;;  %v82_v4 = vld [vmem:[#allocation7 + $0x10] sm:$0xff] }
  0x10   :  { %v120_v5 = vld [vmem:[#allocation9] sm:$0xff]  ;;  %103 = vmatpush.msra.mxu0 %v83_v3  ;;  %278 = vmatpush.msra.mxu2 %v83_v3  ;;  %v76_v6 = vld [vmem:[#allocation4] sm:$0xff]  ;;  %v77_v7 = vld [vmem:[#allocation4 + $0x8] sm:$0xff] }
  0x11   :  { %137 = vmatpush.msra.mxu1 %v122_v1  ;;  %283 = vmatpush.msra.mxu3 %v122_v1  ;;  %v81_v8 = vld [vmem:[#allocation7 + $0x8] sm:$0xff]  ;;  %v80_v9 = vld [vmem:[#allocation7] sm:$0xff]  ;;  %v292_v10 = vld [vmem:[%s490_s4] ss:$0 sm:$0xff] }
  0x12   :  { %104 = vmatpush.msra.mxu0 %v82_v4  ;;  %279 = vmatpush.msra.mxu2 %v82_v4  ;;  %v293_v4 = vld [vmem:[%s489_s3] ss:$0 sm:$0xff]  ;;  %s409_s3 = smov [#allocation10]  }
  0x13   :  { %138 = vmatpush.msra.mxu1 %v121_v2  ;;  %284 = vmatpush.msra.mxu3 %v121_v2  ;;  %s258_s10 = sshll.u32 %s409_s3, 4  ;;  %s259_s10 = int_to_ptr.vmem [resolvable:$true] %s258_s10 }
  0x14   :  { %105 = vmatpush.msra.mxu0 %v81_v8  ;;  %280 = vmatpush.msra.mxu2 %v81_v8 }
  0x15   :  { %139 = vmatpush.msra.mxu1 %v120_v5  ;;  %285 = vmatpush.msra.mxu3 %v120_v5 }
  0x16   :  { %276 = vmatmul.msk.f32.vlgmr.msra.gmra.mxu1 %vm84_vm0, %v76_v6  ;;  %277 = vmatmul.msk.f32.vlgmr.msra.gmra.mxu3 %vm84_vm0, %v77_v7 }
  0x17   :  { %106 = vmatpush.msra.mxu0 %v80_v9  ;;  %281 = vmatpush.msra.mxu2 %v80_v9 }
  0x18   :  { %274 = vmatmul.msk.f32.vlgmr.msra.gmra.mxu0 %vm84_vm0, %v76_v6  ;;  %275 = vmatmul.msk.f32.vlgmr.msra.gmra.mxu2 %vm84_vm0, %v77_v7 }
  0x93   :  { %v141_v11 = vpop.f32.mrf.mxu1 }
  0x94   :  { %v461_v12 = vadd.f32 %v292_v10, %v141_v11 }
  0x95   :  { %v108_v6 = vpop.f32.mrf.mxu0 }
  0x96   :  { %v464_v13 = vmul.f32 0.70710677, %v461_v12  ;;  %v170_v11 = vmul.f32 0.5, %v461_v12 }
  0x98   :  { %v174_v14 = vand.u32 2147483647, %v464_v13  ;;  %vm240_vm9 = vcmp.lt.f32.partialorder %v464_v13, 0.0 }
  0x99   :  { %v144_v15 = vpop.f32.mrf.mxu3 }
  0x9a   :  { %v176_v16 = vmul.f32 0.3275911, %v174_v14  ;;  %v467_v17 = vadd.f32 %v292_v10, %v144_v15  ;;  %v228_v34 = vsub.f32 0.0, %v174_v14 }
  0x9c   :  { %v178_v18 = vadd.f32 1.0, %v176_v16  ;;  %v470_v19 = vmul.f32 0.70710677, %v467_v17  ;;  %v230_v42 = vmul.f32 %v228_v34, %v174_v14  ;;  %v160_v14 = vadd.f32 %v293_v4, %v108_v6 }
  0x9e   :  { %294 = vrcp.f32 %v178_v18  ;;  %v175_v20 = vand.u32 2147483647, %v470_v19  ;;  %v191_v26 = vand.u32 2147483648, %v178_v18  ;;  %vm185_vm1 = vweird.f32 %v178_v18 }
  0x9f   :  { %v189_v28 = vand.u32 2147483647, %v178_v18  ;;  %v232_v50 = vmul.f32 1.442695, %v230_v42  ;;  %vm241_vm10 = vcmp.lt.f32.partialorder %v470_v19, 0.0 }
  0xa0   :  { %v177_v21 = vmul.f32 0.3275911, %v175_v20  ;;  %v192_v31 = vor.u32 1.1754944e-38, %v191_v26  ;;  %v229_v47 = vsub.f32 0.0, %v175_v20 }
  0xa1   :  { %vm190_vm4 = vcmp.eq.f32.partialorder %v189_v28, 8.507059e+37 }
  0xa2   :  { %v179_v22 = vadd.f32 1.0, %v177_v21  ;;  %v231_v54 = vmul.f32 %v229_v47, %v175_v20 }
  0xa4   :  { %v295_v23 = vpop.eup %294  ;;  %296 = vrcp.f32 %v179_v22  ;;  %v206_v37 = vand.u32 2147483648, %v179_v22  ;;  %v204_v40 = vand.u32 2147483647, %v179_v22  ;;  %vm200_vm6 = vweird.f32 %v179_v22 }
  0xa5   :  { %v181_v24 = vmul.f32 %v295_v23, %v178_v18  ;;  %vm186_vm2 = vweird.f32 %v295_v23  ;;  %298 = vpow2.f32 %v232_v50  ;;  %v234_v59 = vmul.f32 1.442695, %v231_v54 }
  0xa6   :  { %vm187_vm3 = vmor %vm185_vm1, %vm186_vm2  ;;  %v207_v44 = vor.u32 1.1754944e-38, %v206_v37  ;;  %vm205_vm8 = vcmp.eq.f32.partialorder %v204_v40, 8.507059e+37 }
  0xa7   :  { %v182_v25 = vsub.f32 1.0, %v181_v24  ;;  %300 = vpow2.f32 %v234_v59 }
  0xa9   :  { %v183_v27 = vmul.f32 %v295_v23, %v182_v25  ;;  %v171_v25 = vmul.f32 0.5, %v467_v17 }
  0xaa   :  { %v297_v29 = vpop.eup %296 }
  0xab   :  { %v184_v30 = vadd.f32 %v295_v23, %v183_v27  ;;  %v196_v32 = vmul.f32 %v297_v29, %v179_v22  ;;  %vm201_vm5 = vweird.f32 %v297_v29  ;;  %v299_v63 = vpop.eup %298  ;;  %v111_v22 = vpop.f32.mrf.mxu2 }
  0xac   :  { %vm202_vm7 = vmor %vm200_vm6, %vm201_vm5  ;;  %v161_v13 = vadd.f32 %v293_v4, %v111_v22 }
  0xad   :  { %v188_v33 = vsel %vm187_vm3, %v295_v23, %v184_v30  ;;  %v197_v35 = vsub.f32 1.0, %v196_v32  ;;  %v301_v9 = vpop.eup %300 }
  0xae   :  { %v193_v36 = vsel %vm190_vm4, %v192_v31, %v188_v33 }
  0xaf   :  { %v210_v38 = vmul.f32 1.0614054, %v193_v36  ;;  %v198_v39 = vmul.f32 %v297_v29, %v197_v35 }
  0xb1   :  { %v212_v41 = vadd.f32 -1.4531521, %v210_v38  ;;  %v199_v43 = vadd.f32 %v297_v29, %v198_v39 }
  0xb3   :  { %v214_v45 = vmul.f32 %v212_v41, %v193_v36  ;;  %v203_v46 = vsel %vm202_vm7, %v297_v29, %v199_v43 }
  0xb4   :  { %v208_v49 = vsel %vm205_vm8, %v207_v44, %v203_v46 }
  0xb5   :  { %v216_v48 = vadd.f32 1.4214138, %v214_v45  ;;  %v211_v51 = vmul.f32 1.0614054, %v208_v49 }
  0xb7   :  { %v218_v52 = vmul.f32 %v216_v48, %v193_v36  ;;  %v213_v53 = vadd.f32 -1.4531521, %v211_v51 }
  0xb9   :  { %v220_v55 = vadd.f32 -0.28449672, %v218_v52  ;;  %v215_v56 = vmul.f32 %v213_v53, %v208_v49 }
  0xbb   :  { %v222_v57 = vmul.f32 %v220_v55, %v193_v36  ;;  %v217_v58 = vadd.f32 1.4214138, %v215_v56 }
  0xbd   :  { %v224_v60 = vadd.f32 0.2548296, %v222_v57  ;;  %v219_v61 = vmul.f32 %v217_v58, %v208_v49 }
  0xbf   :  { %v226_v62 = vmul.f32 %v224_v60, %v193_v36  ;;  %v221_v0 = vadd.f32 -0.28449672, %v219_v61 }
  0xc1   :  { %v236_v1 = vmul.f32 %v299_v63, %v226_v62  ;;  %v223_v2 = vmul.f32 %v221_v0, %v208_v49 }
  0xc3   :  { %v238_v3 = vsub.f32 1.0, %v236_v1  ;;  %v225_v5 = vadd.f32 0.2548296, %v223_v2 }
  0xc5   :  { %v242_v7 = vsub.f32 0.0, %v238_v3  ;;  %v227_v8 = vmul.f32 %v225_v5, %v208_v49 }
  0xc7   :  { %v244_v10 = vsel %vm240_vm9, %v242_v7, %v238_v3  ;;  %v237_v16 = vmul.f32 %v301_v9, %v227_v8 }
  0xc8   :  { %v246_v15 = vadd.f32 1.0, %v244_v10 }
  0xc9   :  { %v239_v20 = vsub.f32 1.0, %v237_v16 }
  0xca   :  { %v248_v18 = vmul.f32 %v246_v15, %v170_v11 }
  0xcb   :  { %v243_v23 = vsub.f32 0.0, %v239_v20 }
  0xcc   :  { %v250_v21 = vmul.f32 %v248_v18, %v160_v14 }
  0xcd   :  { %v245_v24 = vsel %vm241_vm10, %v243_v23, %v239_v20 }
  0xce   :  { %252 = vst [vmem:[#allocation10] sm:$0xff] %v250_v21  ;;  %v247_v26 = vadd.f32 1.0, %v245_v24 }
  0xd0   :  { %v249_v12 = vmul.f32 %v247_v26, %v171_v25 }
  0xd2   :  { %v251_v27 = vmul.f32 %v249_v12, %v161_v13 }
  0xd4   :  { %253 = vst [vmem:[#allocation10 + $0x8] sm:$0xff] %v251_v27 }
  0xd5   :  { %266 = dma.vmem_to_hbm [thread:$0]  %s259_s10, 256, %s261_s13, [#allocation6], %s405_s26, %s405_s26, %s406_s27  }
  0xd6   :  { %402 = dma.done.wait [#allocation6], 256  }
  0xd7   :  { %403 = vsyncadd [#allocation6], 4294967040 }
  0xd8   :  { %271 = vsyncpa [#allocation5], 1 }
  0xd9   :  { %272 = vsyncpa [#allocation8], 1 }
  0xda   :  { %273 = vsyncpa [#allocation6], 1 }

// kernel: tpu_custom_call.1
= control target key start
LH: loop header
LB: loop body
LE: loop exit
PB: predicated region body
PF: predicated region fallthrough
CT: control target
= control target key end

     0   :  { %10 = vsyncpa [#allocation5], 0  ;;  %s486_s0 = inlined_call_operand.hbm [shape: f32[16,32], index: 0, kind: input, shape index: {}]   ;;  %s487_s1 = inlined_call_operand.hbm [shape: f32[32,128], index: 1, kind: input, shape index: {}]   ;;  %s488_s2 = inlined_call_operand.hbm [shape: f32[32,128], index: 2, kind: input, shape index: {}]   ;;  %s489_s3 = inlined_call_operand.vmem [shape: f32[1,128], index: 3, kind: input, shape index: {}]   ;;  %s490_s4 = inlined_call_operand.vmem [shape: f32[1,128], index: 4, kind: input, shape index: {}]   ;;  %s491_s5 = inlined_call_operand.hbm [shape: f32[16,128], index: 5, kind: output, shape index: {}]  }
   0x1   :  { %11 = vsyncpa [#allocation8], 0 }
   0x2   :  { %12 = vsyncpa [#allocation6], 0  ;;  %s30_s20 = sshll.u32 %s487_s1, 4  ;;  %s404_s21 = smov [#allocation7]   ;;  %s31_s20 = int_to_ptr.hbm [resolvable:$true] %s30_s20 }
   0x3   :  { %s32_s22 = sshll.u32 %s404_s21, 4  ;;  %s17_s25 = sshll.u32 %s486_s0, 4  ;;  %s33_s22 = int_to_ptr.vmem [resolvable:$true] %s32_s22  ;;  %s18_s25 = int_to_ptr.hbm [resolvable:$true] %s17_s25 }
   0x4   :  { %s405_s26 = smov 128   ;;  %s406_s27 = smov 8  }
   0x5   :  { %38 = dma.hbm_to_vmem [thread:$0]  %s31_s20, 512, %s33_s22, [#allocation8], %s405_s26, %s405_s26, %s406_s27  }
   0x6   :  { %s407_s28 = smov [#allocation4]   ;;  %s43_s1 = sshll.u32 %s488_s2, 4  ;;  %s44_s1 = int_to_ptr.hbm [resolvable:$true] %s43_s1 }
   0x7   :  { %s19_s29 = sshll.u32 %s407_s28, 4  ;;  %s408_s0 = smov [#allocation9]   ;;  %s20_s29 = int_to_ptr.vmem [resolvable:$true] %s19_s29 }
   0x8   :  { %25 = dma.hbm_to_vmem [thread:$0]  %s18_s25, 256, %s20_s29, [#allocation5], %s405_s26, %s405_s26, %s406_s27  }
   0x9   :  { %s45_s7 = sshll.u32 %s408_s0, 4  ;;  %s46_s7 = int_to_ptr.vmem [resolvable:$true] %s45_s7 }
   0xa   :  { %51 = dma.hbm_to_vmem [thread:$0]  %s44_s1, 512, %s46_s7, [#allocation8], %s405_s26, %s405_s26, %s406_s27  }
   0xb   :  { %398 = dma.done.wait [#allocation5], 256  }
   0xc   :  { %399 = vsyncadd [#allocation5], 4294967040 }
   0xd   :  { %400 = dma.done.wait [#allocation8], 1024  }
   0xe   :  { %401 = vsyncadd [#allocation8], 4294966272  ;;  %v123_v0 = vld [vmem:[#allocation9 + $0x18] sm:$0xff]  ;;  %v122_v1 = vld [vmem:[#allocation9 + $0x10] sm:$0xff]  ;;  %vm84_vm0 = vcmask 261120   ;;  %s260_s13 = sshll.u32 %s491_s5, 4  ;;  %s261_s13 = int_to_ptr.hbm [resolvable:$true] %s260_s13 }
   0xf   :  { %136 = vmatpush.msra.mxu1 %v123_v0  ;;  %282 = vmatpush.msra.mxu3 %v123_v0  ;;  %v121_v2 = vld [vmem:[#allocation9 + $0x8] sm:$0xff]  ;;  %v83_v3 = vld [vmem:[#allocation7 + $0x18] sm:$0xff]  ;;  %v82_v4 = vld [vmem:[#allocation7 + $0x10] sm:$0xff] }
  0x10   :  { %v120_v5 = vld [vmem:[#allocation9] sm:$0xff]  ;;  %103 = vmatpush.msra.mxu0 %v83_v3  ;;  %278 = vmatpush.msra.mxu2 %v83_v3  ;;  %v76_v6 = vld [vmem:[#allocation4] sm:$0xff]  ;;  %v77_v7 = vld [vmem:[#allocation4 + $0x8] sm:$0xff] }
  0x11   :  { %137 = vmatpush.msra.mxu1 %v122_v1  ;;  %283 = vmatpush.msra.mxu3 %v122_v1  ;;  %v81_v8 = vld [vmem:[#allocation7 + $0x8] sm:$0xff]  ;;  %v80_v9 = vld [vmem:[#allocation7] sm:$0xff]  ;;  %v292_v10 = vld [vmem:[%s490_s4] ss:$0 sm:$0xff] }
  0x12   :  { %104 = vmatpush.msra.mxu0 %v82_v4  ;;  %279 = vmatpush.msra.mxu2 %v82_v4  ;;  %v293_v4 = vld [vmem:[%s489_s3] ss:$0 sm:$0xff]  ;;  %s409_s3 = smov [#allocation10]  }
  0x13   :  { %138 = vmatpush.msra.mxu1 %v121_v2  ;;  %284 = vmatpush.msra.mxu3 %v121_v2  ;;  %s258_s10 = sshll.u32 %s409_s3, 4  ;;  %s259_s10 = int_to_ptr.vmem [resolvable:$true] %s258_s10 }
  0x14   :  { %105 = vmatpush.msra.mxu0 %v81_v8  ;;  %280 = vmatpush.msra.mxu2 %v81_v8 }
  0x15   :  { %139 = vmatpush.msra.mxu1 %v120_v5  ;;  %285 = vmatpush.msra.mxu3 %v120_v5 }
  0x16   :  { %276 = vmatmul.msk.f32.vlgmr.msra.gmra.mxu1 %vm84_vm0, %v76_v6  ;;  %277 = vmatmul.msk.f32.vlgmr.msra.gmra.mxu3 %vm84_vm0, %v77_v7 }
  0x17   :  { %106 = vmatpush.msra.mxu0 %v80_v9  ;;  %281 = vmatpush.msra.mxu2 %v80_v9 }
  0x18   :  { %274 = vmatmul.msk.f32.vlgmr.msra.gmra.mxu0 %vm84_vm0, %v76_v6  ;;  %275 = vmatmul.msk.f32.vlgmr.msra.gmra.mxu2 %vm84_vm0, %v77_v7 }
  0x93   :  { %v141_v11 = vpop.f32.mrf.mxu1 }
  0x94   :  { %v461_v12 = vadd.f32 %v292_v10, %v141_v11 }
  0x95   :  { %v108_v6 = vpop.f32.mrf.mxu0 }
  0x96   :  { %v464_v13 = vmul.f32 0.70710677, %v461_v12  ;;  %v170_v11 = vmul.f32 0.5, %v461_v12 }
  0x98   :  { %v174_v14 = vand.u32 2147483647, %v464_v13  ;;  %vm240_vm9 = vcmp.lt.f32.partialorder %v464_v13, 0.0 }
  0x99   :  { %v144_v15 = vpop.f32.mrf.mxu3 }
  0x9a   :  { %v176_v16 = vmul.f32 0.3275911, %v174_v14  ;;  %v467_v17 = vadd.f32 %v292_v10, %v144_v15  ;;  %v228_v34 = vsub.f32 0.0, %v174_v14 }
  0x9c   :  { %v178_v18 = vadd.f32 1.0, %v176_v16  ;;  %v470_v19 = vmul.f32 0.70710677, %v467_v17  ;;  %v230_v42 = vmul.f32 %v228_v34, %v174_v14  ;;  %v160_v14 = vadd.f32 %v293_v4, %v108_v6 }
  0x9e   :  { %294 = vrcp.f32 %v178_v18  ;;  %v175_v20 = vand.u32 2147483647, %v470_v19  ;;  %v191_v26 = vand.u32 2147483648, %v178_v18  ;;  %vm185_vm1 = vweird.f32 %v178_v18 }
  0x9f   :  { %v189_v28 = vand.u32 2147483647, %v178_v18  ;;  %v232_v50 = vmul.f32 1.442695, %v230_v42  ;;  %vm241_vm10 = vcmp.lt.f32.partialorder %v470_v19, 0.0 }
  0xa0   :  { %v177_v21 = vmul.f32 0.3275911, %v175_v20  ;;  %v192_v31 = vor.u32 1.1754944e-38, %v191_v26  ;;  %v229_v47 = vsub.f32 0.0, %v175_v20 }
  0xa1   :  { %vm190_vm4 = vcmp.eq.f32.partialorder %v189_v28, 8.507059e+37 }
  0xa2   :  { %v179_v22 = vadd.f32 1.0, %v177_v21  ;;  %v231_v54 = vmul.f32 %v229_v47, %v175_v20 }
  0xa4   :  { %v295_v23 = vpop.eup %294  ;;  %296 = vrcp.f32 %v179_v22  ;;  %v206_v37 = vand.u32 2147483648, %v179_v22  ;;  %v204_v40 = vand.u32 2147483647, %v179_v22  ;;  %vm200_vm6 = vweird.f32 %v179_v22 }
  0xa5   :  { %v181_v24 = vmul.f32 %v295_v23, %v178_v18  ;;  %vm186_vm2 = vweird.f32 %v295_v23  ;;  %298 = vpow2.f32 %v232_v50  ;;  %v234_v59 = vmul.f32 1.442695, %v231_v54 }
  0xa6   :  { %vm187_vm3 = vmor %vm185_vm1, %vm186_vm2  ;;  %v207_v44 = vor.u32 1.1754944e-38, %v206_v37  ;;  %vm205_vm8 = vcmp.eq.f32.partialorder %v204_v40, 8.507059e+37 }
  0xa7   :  { %v182_v25 = vsub.f32 1.0, %v181_v24  ;;  %300 = vpow2.f32 %v234_v59 }
  0xa9   :  { %v183_v27 = vmul.f32 %v295_v23, %v182_v25  ;;  %v171_v25 = vmul.f32 0.5, %v467_v17 }
  0xaa   :  { %v297_v29 = vpop.eup %296 }
  0xab   :  { %v184_v30 = vadd.f32 %v295_v23, %v183_v27  ;;  %v196_v32 = vmul.f32 %v297_v29, %v179_v22  ;;  %vm201_vm5 = vweird.f32 %v297_v29  ;;  %v299_v63 = vpop.eup %298  ;;  %v111_v22 = vpop.f32.mrf.mxu2 }
  0xac   :  { %vm202_vm7 = vmor %vm200_vm6, %vm201_vm5  ;;  %v161_v13 = vadd.f32 %v293_v4, %v111_v22 }
  0xad   :  { %v188_v33 = vsel %vm187_vm3, %v295_v23, %v184_v30  ;;  %v197_v35 = vsub.f32 1.0, %v196_v32  ;;  %v301_v9 = vpop.eup %300 }
  0xae   :  { %v193_v36 = vsel %vm190_vm4, %v192_v31, %v188_v33 }
  0xaf   :  { %v210_v38 = vmul.f32 1.0614054, %v193_v36  ;;  %v198_v39 = vmul.f32 %v297_v29, %v197_v35 }
  0xb1   :  { %v212_v41 = vadd.f32 -1.4531521, %v210_v38  ;;  %v199_v43 = vadd.f32 %v297_v29, %v198_v39 }
  0xb3   :  { %v214_v45 = vmul.f32 %v212_v41, %v193_v36  ;;  %v203_v46 = vsel %vm202_vm7, %v297_v29, %v199_v43 }
  0xb4   :  { %v208_v49 = vsel %vm205_vm8, %v207_v44, %v203_v46 }
  0xb5   :  { %v216_v48 = vadd.f32 1.4214138, %v214_v45  ;;  %v211_v51 = vmul.f32 1.0614054, %v208_v49 }
  0xb7   :  { %v218_v52 = vmul.f32 %v216_v48, %v193_v36  ;;  %v213_v53 = vadd.f32 -1.4531521, %v211_v51 }
  0xb9   :  { %v220_v55 = vadd.f32 -0.28449672, %v218_v52  ;;  %v215_v56 = vmul.f32 %v213_v53, %v208_v49 }
  0xbb   :  { %v222_v57 = vmul.f32 %v220_v55, %v193_v36  ;;  %v217_v58 = vadd.f32 1.4214138, %v215_v56 }
  0xbd   :  { %v224_v60 = vadd.f32 0.2548296, %v222_v57  ;;  %v219_v61 = vmul.f32 %v217_v58, %v208_v49 }
  0xbf   :  { %v226_v62 = vmul.f32 %v224_v60, %v193_v36  ;;  %v221_v0 = vadd.f32 -0.28449672, %v219_v61 }
  0xc1   :  { %v236_v1 = vmul.f32 %v299_v63, %v226_v62  ;;  %v223_v2 = vmul.f32 %v221_v0, %v208_v49 }
  0xc3   :  { %v238_v3 = vsub.f32 1.0, %v236_v1  ;;  %v225_v5 = vadd.f32 0.2548296, %v223_v2 }
  0xc5   :  { %v242_v7 = vsub.f32 0.0, %v238_v3  ;;  %v227_v8 = vmul.f32 %v225_v5, %v208_v49 }
  0xc7   :  { %v244_v10 = vsel %vm240_vm9, %v242_v7, %v238_v3  ;;  %v237_v16 = vmul.f32 %v301_v9, %v227_v8 }
  0xc8   :  { %v246_v15 = vadd.f32 1.0, %v244_v10 }
  0xc9   :  { %v239_v20 = vsub.f32 1.0, %v237_v16 }
  0xca   :  { %v248_v18 = vmul.f32 %v246_v15, %v170_v11 }
  0xcb   :  { %v243_v23 = vsub.f32 0.0, %v239_v20 }
  0xcc   :  { %v250_v21 = vmul.f32 %v248_v18, %v160_v14 }
  0xcd   :  { %v245_v24 = vsel %vm241_vm10, %v243_v23, %v239_v20 }
  0xce   :  { %252 = vst [vmem:[#allocation10] sm:$0xff] %v250_v21  ;;  %v247_v26 = vadd.f32 1.0, %v245_v24 }
  0xd0   :  { %v249_v12 = vmul.f32 %v247_v26, %v171_v25 }
  0xd2   :  { %v251_v27 = vmul.f32 %v249_v12, %v161_v13 }
  0xd4   :  { %253 = vst [vmem:[#allocation10 + $0x8] sm:$0xff] %v251_v27 }
  0xd5   :  { %266 = dma.vmem_to_hbm [thread:$0]  %s259_s10, 256, %s261_s13, [#allocation6], %s405_s26, %s405_s26, %s406_s27  }
  0xd6   :  { %402 = dma.done.wait [#allocation6], 256  }
  0xd7   :  { %403 = vsyncadd [#allocation6], 4294967040 }
  0xd8   :  { %271 = vsyncpa [#allocation5], 1 }
  0xd9   :  { %272 = vsyncpa [#allocation8], 1 }
  0xda   :  { %273 = vsyncpa [#allocation6], 1 }

</bundles_post_ra>
